<compile_context>
chip_gen: v6e
topology: v6e:2x2x1
jax: 0.10.0
libtpu: 0.0.40
codegen_flags: <defaults>
</compile_context>

<pallas_src>
import functools

import jax
import jax.numpy as jnp
from jax.experimental import pallas as pl
from jax.experimental.pallas import tpu as pltpu

LANE = 128  # TPU lane width


def _round_up(x, m):
    return ((x + m - 1) // m) * m


def _tile_budget():
    """(max lane tile, scoped-VMEM limit) derived from the chip's VMEM size."""
    try:
        vmem_bytes = pltpu.get_tpu_info().vmem_capacity_bytes
    except Exception:
        vmem_bytes = 64 << 20  # unknown target: assume the smallest (v7x, 64 MiB)
    if vmem_bytes >= (96 << 20):       # v5e / v6e: 128 MiB physical VMEM
        return 128 * 1024, 96 << 20
    return 64 * 1024, 48 << 20         # v7x: 64 MiB physical VMEM


def _choose_tiles(batch, tb_max):
    """Balanced lane tiles; >= 2 grid steps when the batch allows (megacore)."""
    b128 = _round_up(max(batch, 1), LANE)
    n_steps = max(pl.cdiv(b128, tb_max), 1)
    if b128 >= 2 * LANE:
        n_steps = max(n_steps, 2)      # let "parallel" shard across v7x's 2 TCs
    tb = _round_up(pl.cdiv(b128, n_steps), LANE)
    b_pad = _round_up(b128, tb)
    return tb, b_pad


def critic_kernel(p_ref, x_ref, o_ref, *, state_dim):
    # p_ref: [hidden, state_dim + 3] packed params:
    #          cols [0, state_dim)  -> fc1.weight^T rows  (W1^T, [hidden, state_dim])
    #          col  state_dim       -> fc1.bias           (b1, [hidden])
    #          col  state_dim + 1   -> output.weight      (w2, [hidden])
    #          [0,  state_dim + 2]  -> output.bias        (b2 scalar)
    # x_ref: [state_dim, tb]   (batch on the lane axis -> lane-dense loads)
    # o_ref: [1, tb]           (lane-dense stores)
    p = p_ref[...]

    # fc1 on the VPU: `state_dim` broadcast multiply-adds (K is tiny).
    h = p[:, state_dim:state_dim + 1]                    # b1 column, [hidden, 1]
    for k in range(state_dim):                           # static unroll
        h = h + p[:, k:k + 1] * x_ref[k:k + 1, :]        # [hidden,1]*[1,tb] -> [hidden,tb]

    # relu + output layer: w2-weighted cross-sublane (XLU) reduction + bias.
    # (Padded sublanes above `hidden` are masked by Mosaic in the reduce.)
    v = jnp.sum(p[:, state_dim + 1:state_dim + 2] * jnp.maximum(h, 0.0),
                axis=0, keepdims=True)
    o_ref[...] = (v + p[0:1, state_dim + 2:state_dim + 3]).astype(o_ref.dtype)


def pack_params(w1, b1, w2, b2):
    """Pack (w1 [S,H], b1 [1,H], w2 [H,1], b2 [1,1]) into one [H, S+3] f32 slab.

    Call once and reuse the slab across forward calls.
    """
    state_dim, hidden = w1.shape
    slab = jnp.zeros((hidden, state_dim + 3), jnp.float32)
    slab = slab.at[:, :state_dim].set(w1.T.astype(jnp.float32))
    slab = slab.at[:, state_dim].set(b1.reshape(hidden).astype(jnp.float32))
    slab = slab.at[:, state_dim + 1].set(w2.reshape(hidden).astype(jnp.float32))
    slab = slab.at[0, state_dim + 2].set(b2.reshape(()).astype(jnp.float32))
    return slab


def critic_forward(x, packed_params):
    """x: [B, state_dim] f32, packed_params: [hidden, state_dim+3] (pack_params).

    Returns [B, 1] f32, matching CriticNet.forward. jit-friendly.
    """
    B, state_dim = x.shape
    hidden = packed_params.shape[0]
    assert packed_params.shape[1] == state_dim + 3

    tb_max, vmem_limit = _tile_budget()
    tb, b_pad = _choose_tiles(B, tb_max)

    # Single fused relayout pass: batch onto the lane axis, padded to the tile.
    # TODO(synk): eliminate entirely by producing x in [state_dim, B] upstream.
    x_t = jnp.pad(x.astype(jnp.float32).T, ((0, 0), (0, b_pad - B)))

    kernel = functools.partial(critic_kernel, state_dim=state_dim)

    out_t = pl.pallas_call(
        kernel,
        out_shape=jax.ShapeDtypeStruct((1, b_pad), jnp.float32),
        grid=(b_pad // tb,),
        in_specs=[
            # tiny packed-parameter block, same block every grid step
            pl.BlockSpec((hidden, state_dim + 3), lambda i: (0, 0)),
            # lane-dense x tile
            pl.BlockSpec((state_dim, tb), lambda i: (0, i)),
        ],
        out_specs=pl.BlockSpec((1, tb), lambda i: (0, i)),
        compiler_params=pltpu.CompilerParams(
            dimension_semantics=("parallel",),   # batch axis -> megacore sharding
            vmem_limit_bytes=vmem_limit,
        ),
    )(packed_params, x_t)

    # Padded tail columns hold garbage; this slice discards them -- keep it.
    return out_t[0, :B].reshape(B, 1)


def critic_apply(x, w1, b1, w2, b2):
    """Convenience wrapper (packs params on every call -- prefer pack_params once)."""
    return critic_forward(x, pack_params(w1, b1, w2, b2))


def init_params(key, state_dim, hidden=12, out_dim=1):
    """Deterministic init mimicking PyTorch nn.Linear default (uniform +/-1/sqrt(fan_in))."""
    k1, k2, k3, k4 = jax.random.split(key, 4)
    bound1 = 1.0 / jnp.sqrt(state_dim)
    bound2 = 1.0 / jnp.sqrt(hidden)
    w1 = jax.random.uniform(k1, (state_dim, hidden), jnp.float32, -bound1, bound1)
    b1 = jax.random.uniform(k2, (1, hidden), jnp.float32, -bound1, bound1)
    w2 = jax.random.uniform(k3, (hidden, out_dim), jnp.float32, -bound2, bound2)
    b2 = jax.random.uniform(k4, (1, out_dim), jnp.float32, -bound2, bound2)
    return w1, b1, w2, b2


if __name__ == "__main__":
    key = jax.random.PRNGKey(0)
    k_x, k_x2, k_p = jax.random.split(key, 3)

    state_dim = 2   # MountainCar-v0 observation: [position, velocity]
    w1, b1, w2, b2 = init_params(k_p, state_dim)

    # Pack the parameter slab ONCE and reuse it; jit the whole forward so the
    # relayout + pallas_call live in a single dispatch.
    packed = jax.block_until_ready(pack_params(w1, b1, w2, b2))
    fwd = jax.jit(critic_forward)

    def reference(x):
        return jnp.maximum(x @ w1 + b1, 0.0) @ w2 + b2

    # Small RL-style batch (single grid step).
    x_small = jax.random.normal(k_x, (8, state_dim), jnp.float32)
    out_small = jax.block_until_ready(fwd(x_small, packed))
    assert out_small.shape == (8, 1)
    assert jnp.allclose(out_small, reference(x_small), atol=1e-5, rtol=1e-5)

    # Larger batch exercising balanced multi-step tiling + tail padding.
    x_big = jax.random.normal(k_x2, (300, state_dim), jnp.float32)
    out_big = jax.block_until_ready(fwd(x_big, packed))
    assert out_big.shape == (300, 1)
    assert jnp.allclose(out_big, reference(x_big), atol=1e-5, rtol=1e-5)

    print("KERNEL_OK")
</pallas_src>

<mosaic_0001>
module attributes {stable_mosaic.version = 11 : i64} {
  func.func @critic_kernel(%arg0: i32, %arg1: memref<12x5xf32, #tpu.memory_space<vmem>>, %arg2: memref<2x128xf32, #tpu.memory_space<vmem>>, %arg3: memref<1x128xf32, #tpu.memory_space<vmem>>) attributes {dimension_semantics = [#tpu.dimension_semantics<parallel>], iteration_bounds = array<i64: 1>, scalar_prefetch = 0 : i64, scratch_operands = 0 : i64, tpu.core_type = #tpu.core_type<tc>, window_params = [{pipeline_mode = #tpu.pipeline_mode<synchronous>, transform_indices = @transform_0, window_bounds = array<i64: 12, 5>}, {transform_indices = @transform_1, window_bounds = array<i64: 2, 128>}, {transform_indices = @transform_2, window_bounds = array<i64: 1, 128>}]} {
    %c0 = arith.constant 0 : index
    %c0_0 = arith.constant 0 : index
    %0 = vector.load %arg1[%c0, %c0_0] : memref<12x5xf32, #tpu.memory_space<vmem>>, vector<12x5xf32>
    %1 = vector.extract_strided_slice %0 {offsets = [0, 2], sizes = [12, 1], strides = [1, 1]} : vector<12x5xf32> to vector<12x1xf32>
    %2 = vector.extract_strided_slice %0 {offsets = [0, 0], sizes = [12, 1], strides = [1, 1]} : vector<12x5xf32> to vector<12x1xf32>
    %c0_1 = arith.constant 0 : index
    %c0_2 = arith.constant 0 : index
    %3 = vector.load %arg2[%c0_1, %c0_2] : memref<2x128xf32, #tpu.memory_space<vmem>>, vector<1x128xf32>
    %4 = vector.broadcast %2 : vector<12x1xf32> to vector<12x128xf32>
    %5 = vector.broadcast %3 : vector<1x128xf32> to vector<12x128xf32>
    %6 = arith.mulf %4, %5 : vector<12x128xf32>
    %7 = vector.broadcast %1 : vector<12x1xf32> to vector<12x128xf32>
    %8 = arith.addf %7, %6 : vector<12x128xf32>
    %9 = vector.extract_strided_slice %0 {offsets = [0, 1], sizes = [12, 1], strides = [1, 1]} : vector<12x5xf32> to vector<12x1xf32>
    %c1 = arith.constant 1 : index
    %c0_3 = arith.constant 0 : index
    %10 = vector.load %arg2[%c1, %c0_3] : memref<2x128xf32, #tpu.memory_space<vmem>>, vector<1x128xf32>
    %11 = vector.broadcast %9 : vector<12x1xf32> to vector<12x128xf32>
    %12 = vector.broadcast %10 : vector<1x128xf32> to vector<12x128xf32>
    %13 = arith.mulf %11, %12 : vector<12x128xf32>
    %14 = arith.addf %8, %13 : vector<12x128xf32>
    %15 = vector.extract_strided_slice %0 {offsets = [0, 3], sizes = [12, 1], strides = [1, 1]} : vector<12x5xf32> to vector<12x1xf32>
    %cst = arith.constant 0.000000e+00 : f32
    %16 = vector.broadcast %cst : f32 to vector<12x128xf32>
    %17 = arith.maximumf %14, %16 : vector<12x128xf32>
    %18 = vector.broadcast %15 : vector<12x1xf32> to vector<12x128xf32>
    %19 = arith.mulf %18, %17 : vector<12x128xf32>
    %cst_4 = arith.constant dense<0.000000e+00> : vector<128xf32>
    %20 = vector.multi_reduction <add>, %19, %cst_4 [0] : vector<12x128xf32> to vector<128xf32>
    %21 = vector.shape_cast %20 : vector<128xf32> to vector<1x128xf32>
    %22 = vector.extract_strided_slice %0 {offsets = [0, 4], sizes = [1, 1], strides = [1, 1]} : vector<12x5xf32> to vector<1x1xf32>
    %23 = vector.broadcast %22 : vector<1x1xf32> to vector<1x128xf32>
    %24 = arith.addf %21, %23 : vector<1x128xf32>
    %c0_5 = arith.constant 0 : index
    %c0_6 = arith.constant 0 : index
    %25 = vector.load %arg3[%c0_5, %c0_6] : memref<1x128xf32, #tpu.memory_space<vmem>>, vector<1x128xf32>
    tpu.vector_store %arg3[%c0_5, %c0_6], %24 {strides = array<i32>} : memref<1x128xf32, #tpu.memory_space<vmem>>, vector<1x128xf32>,
    return
  }
  func.func @transform_0(%arg0: i32) -> (i32, i32) {
    %c0_i32 = arith.constant 0 : i32
    %c0_i32_0 = arith.constant 0 : i32
    %c0_i32_1 = arith.constant 0 : i32
    return %c0_i32, %c0_i32_0 : i32, i32
  }
  func.func @transform_1(%arg0: i32) -> (i32, i32) {
    %c0_i32 = arith.constant 0 : i32
    %c0_i32_0 = arith.constant 0 : i32
    return %c0_i32, %arg0 : i32, i32
  }
  func.func @transform_2(%arg0: i32) -> (i32, i32) {
    %c0_i32 = arith.constant 0 : i32
    %c0_i32_0 = arith.constant 0 : i32
    return %c0_i32, %arg0 : i32, i32
  }
}

</mosaic_0001>

<bundles_post_ra>
// kernel: critic_forward.1
= control target key start
LH: loop header
LB: loop body
LE: loop exit
PB: predicated region body
PF: predicated region fallthrough
CT: control target
= control target key end

     0   :  { %v103_v0 = vmov 2   ;;  %v104_v1 = vmov 0   ;;  %v105_v4 = vmov 1   ;;  %v106_v5 = vmov 3   ;;  %s138_s0 = inlined_call_operand.vmem [shape: f32[12,5], index: 0, kind: input, shape index: {}]   ;;  %s139_s1 = inlined_call_operand.vmem [shape: f32[2,128], index: 1, kind: input, shape index: {}]   ;;  %s140_s2 = inlined_call_operand.vmem [shape: f32[1,128], index: 2, kind: output, shape index: {}]  }
   0x1   :  { %96 = vset.pattern.permute.xlu1 %v103_v0  ;;  %95 = vset.pattern.permute.xlu0 %v104_v1  ;;  %v12_v2 = vld [vmem:[%s138_s0 + $0x8] sm:$0xf]  ;;  %v11_v3 = vld [vmem:[%s138_s0] sm:$0xff]  ;;  %v107_v6 = vmov 4   ;;  %vm69_vm0 = vcmask 1043456  }
   0x2   :  { %35 = vperm.xlu1 %96, %v12_v2   ;;  %21 = vperm.xlu0 %95, %v12_v2   ;;  %v88_v8 = vld [vmem:[%s139_s1] ss:$0 sm:$0xff]  ;;  %v89_v11 = vld [vmem:[%s139_s1 + $0x1] ss:$0 sm:$0xff] }
   0x6   :  { %97 = vset.pattern.permute.xlu1 %v105_v4  ;;  %16 = vperm.xlu0 %95, %v11_v3  }
   0x7   :  { %46 = vperm.xlu1 %97, %v12_v2  }
   0xa   :  { %98 = vset.pattern.permute.xlu0 %v103_v0 }
   0xb   :  { %42 = vperm.xlu1 %97, %v11_v3   ;;  %31 = vperm.xlu0 %98, %v11_v3  }
   0xf   :  { %99 = vset.pattern.permute.xlu1 %v106_v5  ;;  %100 = vset.pattern.permute.xlu0 %v106_v5 }
  0x10   :  { %64 = vperm.xlu1 %99, %v12_v2   ;;  %60 = vperm.xlu0 %100, %v11_v3  }
  0x14   :  { %101 = vset.pattern.permute.xlu1 %v107_v6  ;;  %102 = vset.pattern.permute.xlu0 %v107_v6 }
  0x15   :  { %79 = vperm.xlu1 %101, %v11_v3  }
  0x7d   :  { %v36_v7 = vpop.permute.xlu1 %35  ;;  %v22_v9 = vpop.permute.xlu0 %21 }
  0x7e   :  { %v29_v10 = vmul.f32 %v88_v8, %v22_v9 }
  0x80   :  { %v39_v15 = vadd.f32 %v36_v7, %v29_v10 }
  0x81   :  { %v17_v12 = vpop.permute.xlu0 %16 }
  0x82   :  { %v47_v13 = vpop.permute.xlu1 %46  ;;  %v28_v16 = vmul.f32 %v88_v8, %v17_v12 }
  0x83   :  { %v54_v14 = vmul.f32 %v89_v11, %v47_v13 }
  0x85   :  { %v56_v17 = vadd.f32 %v54_v14, %v39_v15 }
  0x86   :  { %v43_v18 = vpop.permute.xlu1 %42  ;;  %v32_v19 = vpop.permute.xlu0 %31 }
  0x87   :  { %v53_v20 = vmul.f32 %v89_v11, %v43_v18  ;;  %v38_v21 = vadd.f32 %v32_v19, %v28_v16  ;;  %v58_v23 = vmax.f32 %v56_v17, 0.0 }
  0x89   :  { %v55_v22 = vadd.f32 %v53_v20, %v38_v21 }
  0x8b   :  { %v65_v24 = vpop.permute.xlu1 %64  ;;  %v57_v25 = vmax.f32 %v55_v22, 0.0  ;;  %v61_v26 = vpop.permute.xlu0 %60 }
  0x8c   :  { %v68_v27 = vmul.f32 %v65_v24, %v58_v23 }
  0x8d   :  { %v67_v28 = vmul.f32 %v61_v26, %v57_v25 }
  0x8e   :  { %v70_v29 = vsel %vm69_vm0, %v68_v27, 0.0 }
  0x8f   :  { %v71_v30 = vadd.f32 %v70_v29, %v67_v28 }
  0x90   :  { %v80_v36 = vpop.permute.xlu1 %79 }
  0x91   :  { %v72_v31 = vrot.slane %v71_v30, 4 }
  0x93   :  { %v73_v32 = vadd.f32 %v72_v31, %v71_v30 }
  0x95   :  { %v74_v33 = vrot.slane %v73_v32, 2 }
  0x97   :  { %v75_v34 = vadd.f32 %v74_v33, %v73_v32 }
  0x99   :  { %v76_v35 = vrot.slane %v75_v34, 1 }
  0x9b   :  { %v77_v37 = vadd.f32 %v76_v35, %v75_v34 }
  0x9d   :  { %v82_v38 = vadd.f32 %v80_v36, %v77_v37 }
  0x9f   :  { %83 = vst [vmem:[%s140_s2] sm:$0x1] %v82_v38 }

</bundles_post_ra>
